<compile_context>
chip_gen: v7x
topology: tpu7x:2x2x1
jax: 0.10.0
libtpu: 0.0.40
codegen_flags: <defaults>
</compile_context>

<pallas_src>
import functools

import jax
import jax.numpy as jnp
from jax.experimental import pallas as pl
from jax.experimental.pallas import tpu as pltpu

LB_POS = 0.9
LB_NEG = 0.005
LB_IGNORE = 255


def _ls_ce_kernel(logits_ref, label_ref, out_ref,
                  *, lb_pos, lb_neg, lb_ignore, n_cls, hw, tile_cols):
    # logits block: (1, C, TC)   labels block: (1, 1, TC)
    t = pl.program_id(0)
    col0 = t * tile_cols

    # Tail-tile mask: global column index < HW.  (1, 1, TC)
    col = jax.lax.broadcasted_iota(jnp.int32, (1, 1, tile_cols), 2)
    in_bounds = (col0 + col) < hw

    # Cast + zero any out-of-bounds garbage columns before max/exp.
    x = logits_ref[...].astype(jnp.float32)                     # (1, C, TC)
    x = jnp.where(in_bounds, x, 0.0)
    lbl = label_ref[...]                                        # (1, 1, TC)

    # Channel (sublane) reductions directly over x; fold the max afterwards.
    m = jnp.max(x, axis=1, keepdims=True)                       # (1, 1, TC)
    sum_x = jnp.sum(x, axis=1, keepdims=True)                   # (1, 1, TC)
    se = jnp.sum(jnp.exp(x - m), axis=1, keepdims=True)         # (1, 1, TC)
    lse = jnp.log(se)                                           # (1, 1, TC)

    # Gather x at the label index without a full C x TC iota or one-hot:
    # a (1, C, 1) iota broadcasts against the (1, 1, TC) labels.
    iota_c = jax.lax.broadcasted_iota(jnp.int32, (1, n_cls, 1), 1)
    x_at = jnp.sum(jnp.where(iota_c == lbl, x, 0.0),
                   axis=1, keepdims=True)                       # (1, 1, TC)

    valid = jnp.logical_and(lbl != lb_ignore,
                            in_bounds).astype(jnp.float32)      # (1, 1, TC)

    # sum_c logs * (lb_pos*onehot + lb_neg*(1-onehot))
    #   = lb_neg*(sum_xs - C*lse) + (lb_pos - lb_neg)*(xs_at - lse)
    # with sum_xs = sum_x - C*m and xs_at = x_at - m.
    sum_xs = sum_x - float(n_cls) * m
    xs_at = x_at - m
    per_col = (lb_neg * (sum_xs - float(n_cls) * lse)
               + (lb_pos - lb_neg) * (xs_at - lse)) * valid     # (1, 1, TC)

    loss_partial = -jnp.sum(per_col)
    nvalid_partial = jnp.sum(valid)

    # Pack both scalars into one vreg-shaped (8, 128) block:
    #   [0, 0] = partial loss, [0, 1] = partial n_valid.
    r = jax.lax.broadcasted_iota(jnp.int32, (1, 1, 8, 128), 2)
    c = jax.lax.broadcasted_iota(jnp.int32, (1, 1, 8, 128), 3)
    out = jnp.where(jnp.logical_and(r == 0, c == 0), loss_partial, 0.0)
    out = jnp.where(jnp.logical_and(r == 0, c == 1), nvalid_partial, out)
    out_ref[...] = out


def _vmem_config():
    """(f32 block target bytes, vmem_limit cap) based on chip VMEM capacity."""
    try:
        cap = int(getattr(pltpu.get_tpu_info(), "vmem_capacity_bytes",
                          128 << 20))
    except Exception:
        cap = 64 << 20  # conservative default (v7x-sized)
    if cap <= (64 << 20):           # v7x: 64 MiB physical / 32 MiB scoped
        return 3 << 20, 32 << 20
    return 8 << 20, 64 << 20        # v5e / v6e: 128 MiB physical


def label_smooth_softmax_ce(logits_nchw, label_nhw,
                            lb_pos=LB_POS, lb_neg=LB_NEG,
                            lb_ignore=LB_IGNORE, reduction="mean"):
    """Label-smoothing softmax cross-entropy over dim=1 (matches the PyTorch module)."""
    if reduction != "mean":
        # TODO(synk): reduction='none' (per-pixel loss output) not implemented.
        raise NotImplementedError("only reduction='mean' is implemented")

    N, C, H, W = logits_nchw.shape
    HW = H * W
    itemsize = jnp.dtype(logits_nchw.dtype).itemsize

    # Free reshapes only: merge H,W.  No NCHW->NHWC transpose, no padding.
    logits_3d = logits_nchw.reshape(N, C, HW)
    label_3d = label_nhw.reshape(N, 1, HW).astype(jnp.int32)

    # Lane-dense tile over the spatial axis, sized from the f32 working set
    # (C * tile_cols * 4 bytes), always a multiple of 128 lanes.  The last
    # tile may extend past HW; the kernel masks it.
    f32_target, vmem_cap = _vmem_config()
    hw128 = ((HW + 127) // 128) * 128
    tc = (f32_target // (C * 4)) // 128 * 128
    tile_cols = int(max(128, min(tc, hw128)))
    n_tiles = pl.cdiv(HW, tile_cols)

    # VMEM budget: double-buffered inputs + ~4 live f32 C x TC temporaries.
    in_block = C * tile_cols * itemsize
    lbl_block = tile_cols * 4
    f32_block = C * tile_cols * 4
    est = 2 * (in_block + lbl_block) + 4 * f32_block + (1 << 20)
    vmem_limit = int(min(max(est, 16 << 20), vmem_cap))

    kernel = functools.partial(_ls_ce_kernel, lb_pos=lb_pos, lb_neg=lb_neg,
                               lb_ignore=lb_ignore, n_cls=C, hw=HW,
                               tile_cols=tile_cols)

    parts = pl.pallas_call(
        kernel,
        out_shape=jax.ShapeDtypeStruct((n_tiles, N, 8, 128), jnp.float32),
        grid_spec=pltpu.PrefetchScalarGridSpec(
            num_scalar_prefetch=0,
            grid=(n_tiles, N),     # long tile axis leading (megacore split)
            in_specs=[
                pl.BlockSpec((1, C, tile_cols), lambda t, n: (n, 0, t)),
                pl.BlockSpec((1, 1, tile_cols), lambda t, n: (n, 0, t)),
            ],
            out_specs=pl.BlockSpec((1, 1, 8, 128), lambda t, n: (t, n, 0, 0)),
        ),
        compiler_params=pltpu.CompilerParams(
            dimension_semantics=("parallel", "parallel"),
            vmem_limit_bytes=vmem_limit),
    )(logits_3d, label_3d)

    total_loss = jnp.sum(parts[..., 0, 0])
    n_valid = jnp.sum(parts[..., 0, 1])
    # NOTE: n_valid == 0 (all pixels ignored) yields NaN/Inf, matching the
    # PyTorch module.
    return total_loss / n_valid


def _reference(logits_nchw, label_nhw,
               lb_pos=LB_POS, lb_neg=LB_NEG, lb_ignore=LB_IGNORE):
    """Pure-JAX reference mirroring the PyTorch forward (reduction='mean')."""
    N, C, H, W = logits_nchw.shape
    logs = jax.nn.log_softmax(logits_nchw.astype(jnp.float32), axis=1)
    ignore = label_nhw == lb_ignore
    n_valid = jnp.sum(~ignore)
    lbl = jnp.where(ignore, 0, label_nhw)
    onehot = jax.nn.one_hot(lbl, C, axis=1, dtype=logs.dtype)
    smooth = lb_pos * onehot + lb_neg * (1.0 - onehot)
    smooth = jnp.where(ignore[:, None, :, :], 0.0, smooth)
    return -jnp.sum(logs * smooth) / n_valid


if __name__ == "__main__":
    key = jax.random.PRNGKey(0)

    # Case 1: HW is a multiple of 128 (no tail masking needed).
    k1, k2, k3, key = jax.random.split(key, 4)
    N, C, H, W = 2, 4, 16, 16
    logits = jax.random.normal(k1, (N, C, H, W), dtype=jnp.float32)
    label = jax.random.randint(k2, (N, H, W), 0, C, dtype=jnp.int32)
    label = jnp.where(jax.random.uniform(k3, (N, H, W)) < 0.1, LB_IGNORE, label)

    loss = jax.block_until_ready(label_smooth_softmax_ce(logits, label))
    ref = _reference(logits, label)
    assert jnp.allclose(loss, ref, rtol=1e-5, atol=1e-5), (float(loss), float(ref))

    # Case 2: ragged HW (15*15 = 225, not a multiple of 128) with bf16 logits
    # -> exercises the in-kernel tail masking path.
    k1, k2, k3, key = jax.random.split(key, 4)
    N2, C2, H2, W2 = 2, 5, 15, 15
    logits2 = jax.random.normal(k1, (N2, C2, H2, W2), dtype=jnp.float32
                                ).astype(jnp.bfloat16)
    label2 = jax.random.randint(k2, (N2, H2, W2), 0, C2, dtype=jnp.int32)
    label2 = jnp.where(jax.random.uniform(k3, (N2, H2, W2)) < 0.15,
                       LB_IGNORE, label2)

    loss2 = jax.block_until_ready(label_smooth_softmax_ce(logits2, label2))
    ref2 = _reference(logits2, label2)
    assert jnp.allclose(loss2, ref2, rtol=1e-4, atol=1e-4), (float(loss2), float(ref2))

    print("KERNEL_OK")
</pallas_src>

<mosaic_0001>
module attributes {stable_mosaic.version = 11 : i64} {
  func.func @_ls_ce_kernel(%arg0: i32, %arg1: i32, %arg2: memref<1x4x256xf32, #tpu.memory_space<vmem>>, %arg3: memref<1x1x256xi32, #tpu.memory_space<vmem>>, %arg4: memref<1x1x8x128xf32, #tpu.memory_space<vmem>>) attributes {dimension_semantics = [#tpu.dimension_semantics<parallel>, #tpu.dimension_semantics<parallel>], iteration_bounds = array<i64: 1, 2>, scalar_prefetch = 0 : i64, scratch_operands = 0 : i64, tpu.core_type = #tpu.core_type<tc>, window_params = [{transform_indices = @transform_0, window_bounds = array<i64: 1, 4, 256>}, {transform_indices = @transform_1, window_bounds = array<i64: 1, 1, 256>}, {transform_indices = @transform_2, window_bounds = array<i64: 1, 1, 8, 128>}]} {
    %c256_i32 = arith.constant 256 : i32
    %0 = arith.muli %arg0, %c256_i32 : i32
    %1 = tpu.iota {dimensions = array<i32: 2>} : vector<1x1x256xi32>
    %2 = vector.broadcast %0 : i32 to vector<1x1x256xi32>
    %3 = arith.addi %2, %1 : vector<1x1x256xi32>
    %c256_i32_0 = arith.constant 256 : i32
    %4 = vector.broadcast %c256_i32_0 : i32 to vector<1x1x256xi32>
    %5 = arith.cmpi slt, %3, %4 : vector<1x1x256xi32>
    %c0 = arith.constant 0 : index
    %c0_1 = arith.constant 0 : index
    %c0_2 = arith.constant 0 : index
    %6 = vector.load %arg2[%c0, %c0_1, %c0_2] : memref<1x4x256xf32, #tpu.memory_space<vmem>>, vector<1x4x256xf32>
    %cst = arith.constant 0.000000e+00 : f32
    %7 = vector.shape_cast %5 : vector<1x1x256xi1> to vector<1x1x256xi1>
    %8 = vector.broadcast %7 : vector<1x1x256xi1> to vector<1x4x256xi1>
    %9 = vector.broadcast %cst : f32 to vector<1x4x256xf32>
    %10 = arith.select %8, %6, %9 : vector<1x4x256xi1>, vector<1x4x256xf32>
    %c0_3 = arith.constant 0 : index
    %c0_4 = arith.constant 0 : index
    %c0_5 = arith.constant 0 : index
    %11 = vector.load %arg3[%c0_3, %c0_4, %c0_5] : memref<1x1x256xi32, #tpu.memory_space<vmem>>, vector<1x1x256xi32>
    %cst_6 = arith.constant dense<0xFF800000> : vector<1x256xf32>
    %12 = vector.multi_reduction <maximumf>, %10, %cst_6 [1] : vector<1x4x256xf32> to vector<1x256xf32>
    %13 = vector.shape_cast %12 : vector<1x256xf32> to vector<1x1x256xf32>
    %cst_7 = arith.constant dense<0.000000e+00> : vector<1x256xf32>
    %14 = vector.multi_reduction <add>, %10, %cst_7 [1] : vector<1x4x256xf32> to vector<1x256xf32>
    %15 = vector.shape_cast %14 : vector<1x256xf32> to vector<1x1x256xf32>
    %16 = vector.broadcast %13 : vector<1x1x256xf32> to vector<1x4x256xf32>
    %17 = arith.subf %10, %16 : vector<1x4x256xf32>
    %18 = math.exp %17 : vector<1x4x256xf32>
    %cst_8 = arith.constant dense<0.000000e+00> : vector<1x256xf32>
    %19 = vector.multi_reduction <add>, %18, %cst_8 [1] : vector<1x4x256xf32> to vector<1x256xf32>
    %20 = vector.shape_cast %19 : vector<1x256xf32> to vector<1x1x256xf32>
    %21 = math.log %20 : vector<1x1x256xf32>
    %22 = tpu.iota {dimensions = array<i32: 1>} : vector<1x4x1xi32>
    %23 = vector.broadcast %22 : vector<1x4x1xi32> to vector<1x4x256xi32>
    %24 = vector.broadcast %11 : vector<1x1x256xi32> to vector<1x4x256xi32>
    %25 = arith.cmpi eq, %23, %24 : vector<1x4x256xi32>
    %cst_9 = arith.constant 0.000000e+00 : f32
    %26 = vector.broadcast %cst_9 : f32 to vector<1x4x256xf32>
    %27 = arith.select %25, %10, %26 : vector<1x4x256xi1>, vector<1x4x256xf32>
    %cst_10 = arith.constant dense<0.000000e+00> : vector<1x256xf32>
    %28 = vector.multi_reduction <add>, %27, %cst_10 [1] : vector<1x4x256xf32> to vector<1x256xf32>
    %29 = vector.shape_cast %28 : vector<1x256xf32> to vector<1x1x256xf32>
    %c255_i32 = arith.constant 255 : i32
    %30 = vector.broadcast %c255_i32 : i32 to vector<1x1x256xi32>
    %31 = arith.cmpi ne, %11, %30 : vector<1x1x256xi32>
    %32 = arith.andi %31, %5 : vector<1x1x256xi1>
    %33 = arith.extui %32 : vector<1x1x256xi1> to vector<1x1x256xi32>
    %34 = arith.sitofp %33 : vector<1x1x256xi32> to vector<1x1x256xf32>
    %cst_11 = arith.constant 4.000000e+00 : f32
    %35 = vector.broadcast %cst_11 : f32 to vector<1x1x256xf32>
    %36 = arith.mulf %35, %13 : vector<1x1x256xf32>
    %37 = arith.subf %15, %36 : vector<1x1x256xf32>
    %38 = arith.subf %29, %13 : vector<1x1x256xf32>
    %cst_12 = arith.constant 4.000000e+00 : f32
    %39 = vector.broadcast %cst_12 : f32 to vector<1x1x256xf32>
    %40 = arith.mulf %39, %21 : vector<1x1x256xf32>
    %41 = arith.subf %37, %40 : vector<1x1x256xf32>
    %cst_13 = arith.constant 5.000000e-03 : f32
    %42 = vector.broadcast %cst_13 : f32 to vector<1x1x256xf32>
    %43 = arith.mulf %42, %41 : vector<1x1x256xf32>
    %44 = arith.subf %38, %21 : vector<1x1x256xf32>
    %cst_14 = arith.constant 0.89499998 : f32
    %45 = vector.broadcast %cst_14 : f32 to vector<1x1x256xf32>
    %46 = arith.mulf %45, %44 : vector<1x1x256xf32>
    %47 = arith.addf %43, %46 : vector<1x1x256xf32>
    %48 = arith.mulf %47, %34 : vector<1x1x256xf32>
    %49 = vector.shape_cast %48 : vector<1x1x256xf32> to vector<1x1x1x256xf32>
    %cst_15 = arith.constant dense<0.000000e+00> : vector<1xf32>
    %50 = vector.multi_reduction <add>, %49, %cst_15 [1, 2, 3] : vector<1x1x1x256xf32> to vector<1xf32>
    %51 = vector.shape_cast %50 : vector<1xf32> to vector<1x1x1x1xf32>
    %52 = vector.extract %51[0, 0, 0, 0] : f32 from vector<1x1x1x1xf32>
    %cst_16 = arith.constant 0.000000e+00 : f32
    %53 = arith.subf %cst_16, %52 : f32
    %54 = vector.shape_cast %34 : vector<1x1x256xf32> to vector<1x1x1x256xf32>
    %cst_17 = arith.constant dense<0.000000e+00> : vector<1xf32>
    %55 = vector.multi_reduction <add>, %54, %cst_17 [1, 2, 3] : vector<1x1x1x256xf32> to vector<1xf32>
    %56 = vector.shape_cast %55 : vector<1xf32> to vector<1x1x1x1xf32>
    %57 = vector.extract %56[0, 0, 0, 0] : f32 from vector<1x1x1x1xf32>
    %58 = tpu.iota {dimensions = array<i32: 2>} : vector<1x1x8x128xi32>
    %59 = tpu.iota {dimensions = array<i32: 3>} : vector<1x1x8x128xi32>
    %c0_i32 = arith.constant 0 : i32
    %60 = vector.broadcast %c0_i32 : i32 to vector<1x1x8x128xi32>
    %61 = arith.cmpi eq, %58, %60 : vector<1x1x8x128xi32>
    %c0_i32_18 = arith.constant 0 : i32
    %62 = vector.broadcast %c0_i32_18 : i32 to vector<1x1x8x128xi32>
    %63 = arith.cmpi eq, %59, %62 : vector<1x1x8x128xi32>
    %64 = arith.andi %61, %63 : vector<1x1x8x128xi1>
    %cst_19 = arith.constant 0.000000e+00 : f32
    %65 = vector.broadcast %53 : f32 to vector<1x1x8x128xf32>
    %66 = vector.broadcast %cst_19 : f32 to vector<1x1x8x128xf32>
    %67 = arith.select %64, %65, %66 : vector<1x1x8x128xi1>, vector<1x1x8x128xf32>
    %c0_i32_20 = arith.constant 0 : i32
    %68 = vector.broadcast %c0_i32_20 : i32 to vector<1x1x8x128xi32>
    %69 = arith.cmpi eq, %58, %68 : vector<1x1x8x128xi32>
    %c1_i32 = arith.constant 1 : i32
    %70 = vector.broadcast %c1_i32 : i32 to vector<1x1x8x128xi32>
    %71 = arith.cmpi eq, %59, %70 : vector<1x1x8x128xi32>
    %72 = arith.andi %69, %71 : vector<1x1x8x128xi1>
    %73 = vector.broadcast %57 : f32 to vector<1x1x8x128xf32>
    %74 = arith.select %72, %73, %67 : vector<1x1x8x128xi1>, vector<1x1x8x128xf32>
    %c0_21 = arith.constant 0 : index
    %c0_22 = arith.constant 0 : index
    %c0_23 = arith.constant 0 : index
    %c0_24 = arith.constant 0 : index
    %75 = vector.load %arg4[%c0_21, %c0_22, %c0_23, %c0_24] : memref<1x1x8x128xf32, #tpu.memory_space<vmem>>, vector<1x1x8x128xf32>
    tpu.vector_store %arg4[%c0_21, %c0_22, %c0_23, %c0_24], %74 {strides = array<i32>} : memref<1x1x8x128xf32, #tpu.memory_space<vmem>>, vector<1x1x8x128xf32>,
    return
  }
  func.func @transform_0(%arg0: i32, %arg1: i32) -> (i32, i32, i32) {
    %c0_i32 = arith.constant 0 : i32
    %c0_i32_0 = arith.constant 0 : i32
    return %arg1, %c0_i32, %arg0 : i32, i32, i32
  }
  func.func @transform_1(%arg0: i32, %arg1: i32) -> (i32, i32, i32) {
    %c0_i32 = arith.constant 0 : i32
    %c0_i32_0 = arith.constant 0 : i32
    return %arg1, %c0_i32, %arg0 : i32, i32, i32
  }
  func.func @transform_2(%arg0: i32, %arg1: i32) -> (i32, i32, i32, i32) {
    %c0_i32 = arith.constant 0 : i32
    %c0_i32_0 = arith.constant 0 : i32
    %c0_i32_1 = arith.constant 0 : i32
    return %arg0, %arg1, %c0_i32, %c0_i32_0 : i32, i32, i32, i32
  }
}

</mosaic_0001>

<bundles_post_ra>
// kernel: tpu_custom_call.1
= control target key start
LH: loop header
LB: loop body
LE: loop exit
PB: predicated region body
PF: predicated region fallthrough
CT: control target
= control target key end

     0   :  { %7 = vsyncpa [#allocation3], 0  ;;  %s1068_s0 = inlined_call_operand.hbm [shape: f32[2,4,256], index: 0, kind: input, shape index: {}]   ;;  %s1069_s1 = inlined_call_operand.hbm [shape: s32[2,1,256], index: 1, kind: input, shape index: {}]   ;;  %s1070_s2 = inlined_call_operand.hbm [shape: f32[1,2,8,128], index: 2, kind: output, shape index: {}]  }
   0x1   :  { %9 = vsyncpa [#allocation3 + $0x1], 0 }
   0x2   :  { %10 = vsyncpa [#allocation6], 0 }
   0x3   :  { %12 = vsyncpa [#allocation6 + $0x1], 0 }
   0x4   :  { %13 = vsyncpa [#allocation4], 0 }
   0x5   :  { %15 = vsyncpa [#allocation4 + $0x1], 0  ;;  %s808_s9 = smov 0   ;;  %s810_s10 = smov 0  }
   0x6   :  { %s812_s11 = smov 0   ;;  %s814_s12 = smov 0  }
   0x7   :  { %s816_s13 = smov 0   ;;  %s818_s14 = smov 0  }
   0x8 LB: > { %s535_s15 = sadd.s32 4294967295, %s785_s14   ;;  %s536_s16 = sadd.s32 4294967294, %s785_s14   ;;  %s785_s14 = sphi %s818_s14, %s21_s14   ;;  %s781_s13 = sphi %s816_s13, %s1090_s13   ;;  %s777_s12 = sphi %s814_s12, %s1089_s12   ;;  %s773_s11 = sphi %s812_s11, %s1088_s11   ;;  %s769_s10 = sphi %s810_s10, %s1087_s10   ;;  %s765_s9 = sphi %s808_s9, %s1086_s9  }
   0x9   : > { %s30_s17 = sadd.s32 1, %s781_s13  ;;  %s42_s18 = sadd.s32 1, %s773_s11 }
   0xa   : > { %p31_p0 = scmp.ge.s32.totalorder %s30_s17, 2  ;;  %p49_p1 = scmp.ne.s32.totalorder %s773_s11, %s769_s10 }
   0xb   : > { %p50_p2 = scmp.eq.s32.totalorder %s785_s14, 0  ;;  %p55_p3 = scmp.ne.s32.totalorder %s769_s10, %s765_s9 }
   0xc   : > { %s1092_s17 = smov (%p31_p0, %s30_s17), 0  ;;  %p56_p5 = scmp.eq.s32.totalorder %s535_s15, 0 }
   0xd   : > { %p849_p4 = por %p50_p2, %p49_p1  ;;  %s37_s20 = ssub.s32 %s781_s13, %s1092_s17 }
   0xe   : > { %p109_p6 = scmp.eq.s32.totalorder %s535_s15, 1  ;;  %p40_p7 = scmp.eq.s32.totalorder %s37_s20, 0 }
   0xf   : > { %p855_p8 = por %p56_p5, %p55_p3  ;;  %p115_p10 = scmp.eq.s32.totalorder %s536_s16, 1 }
  0x10   : > { %p859_p9 = por %p109_p6, %p49_p1  ;;  %p577_p13 = scmp.lt.s32.totalorder %s785_s14, 2 }
  0x11   : > { %s1074_s21 = scalar_select %p855_p8, 1, 0 }
  0x12   : > { %s1075_s22 = scalar_select %p859_p9, 1, 0 }
  0x13   : > { %s864_s23 = scalar_select %p40_p7, %s773_s11, %s42_s18  }
  0x14   : > { %p866_p11 = por %p115_p10, %p55_p3  ;;  %s873_s25 = sand.u32 1, %s773_s11  }
  0x15   : > { %s539_s26 = sshll.u32 %s873_s25, 3  ;;  %s554_s27 = sshll.u32 %s781_s13, 7 }
  0x16   : > { %s1076_s24 = scalar_select %p866_p11, 1, 0 }
  0x17   : > { %s880_s30 = scalar_lea.hbm %s1068_s0, %s554_s27  ;;  %s139_s3 = scalar_lea.vmem [#allocation2], %s539_s26 }
  0x18   : > { %s149_s4 = sshll.u32 %s139_s3, 4  ;;  %p886_p0 = pnand %p577_p13, %p849_p4  ;;  %s882_s4 = int_to_ptr.vmem [resolvable:$true] %s149_s4 }
  0x19   : > { %s136_s6 = scalar_lea.sflag [#allocation3], %s873_s25  ;;  %s639_s7 = scalar_lea.hbm %s880_s30, 128 }
  0x1a   : > { %p640_p3 = scmp.ne.s32.totalorder %s880_s30, %s639_s7  ;;  %p641_p5 = pneg %p886_p0 }
  0x1b   : > { %s644_s16 = scalar_lea.hbm %s1068_s0, 256  ;;  %p645_p4 = scmp.lt.u32.totalorder %s880_s30, %s1068_s0 }
  0x1c   : > { %p642_p6 = pnand %p641_p5, %p640_p3  ;;  %p646_p10 = scmp.lt.u32.totalorder %s644_s16, %s639_s7 }
  0x1d   : > { %p648_p12 = scmp.lt.u32.totalorder %s639_s7, %s880_s30 }
  0x1e   : > { %p643_p7 = pneg %p642_p6  ;;  %p647_p13 = por %p646_p10, %p645_p4 }
  0x20   : > { %p649_p1 = por %p648_p12, %p647_p13 }
  0x22   : > { %p650_p2 = pnand %p649_p1, %p643_p7 }
  0x24   : > { %653 = shalt.err (!%p650_p2)
}
  0x25   : > { %s654_s20 = scalar_lea.vmem %s882_s4, 128  ;;  %s787_s26 = smov [#allocation2]  }
  0x26   : > { %p655_p3 = scmp.ne.s32.totalorder %s882_s4, %s654_s20  ;;  %s659_s27 = sshll.u32 %s787_s26, 4  ;;  %s660_s27 = int_to_ptr.vmem [resolvable:$false] %s659_s27 }
  0x27   : > { %s661_s28 = scalar_lea.vmem %s660_s27, 256  ;;  %p662_p9 = scmp.lt.s32.totalorder %s882_s4, %s660_s27 }
  0x28   : > { %p657_p6 = pnand %p655_p3, %p641_p5  ;;  %p663_p4 = scmp.lt.s32.totalorder %s661_s28, %s654_s20 }
  0x2a   : > { %p658_p11 = pneg %p657_p6  ;;  %p664_p10 = por %p663_p4, %p662_p9 }
  0x2c   : > { %p665_p12 = pnand %p664_p10, %p658_p11 }
  0x2e   : > { %668 = shalt.err (!%p665_p12)
}
  0x2f   : > { %569 = dma.hbm_to_vmem [thread:$0]  (!%p886_p0), %s880_s30, 128, %s882_s4, %s136_s6  }
  0x30   : > { %p1078_p1 = scmp.lt.s32.totalorder %s785_s14, 3  ;;  %p1079_p2 = scmp.ge.s32.totalorder %s785_s14, 1 }
  0x31   : > { %s542_s3 = sshll.u32 %s873_s25, 1  ;;  %s555_s7 = sshll.u32 %s781_s13, 5 }
  0x32   : > { %p922_p7 = pnand %p1079_p2, %p1078_p1  ;;  %s931_s16 = scalar_lea.hbm %s1069_s1, %s555_s7 }
  0x33   : > { %s160_s18 = scalar_lea.vmem [#allocation5], %s542_s3  ;;  %s157_s30 = scalar_lea.sflag [#allocation6], %s873_s25 }
  0x34   : > { %s1080_s29 = scalar_select %p922_p7, 1, 0 }
  0x35   : > { %s170_s19 = sshll.u32 %s160_s18, 4  ;;  %s669_s4 = scalar_lea.hbm %s931_s16, 32  ;;  %s171_s19 = int_to_ptr.vmem [resolvable:$true] %s170_s19 }
  0x36   : > { %p670_p9 = scmp.ne.s32.totalorder %s931_s16, %s669_s4  ;;  %s674_s26 = scalar_lea.hbm %s1069_s1, 64 }
  0x37   : > { %p675_p3 = scmp.lt.u32.totalorder %s931_s16, %s1069_s1  ;;  %p676_p6 = scmp.lt.u32.totalorder %s674_s26, %s669_s4 }
  0x38   : > { %p672_p11 = pnand %p670_p9, %p641_p5  ;;  %p678_p10 = scmp.lt.u32.totalorder %s669_s4, %s931_s16 }
  0x39   : > { %p677_p4 = por %p676_p6, %p675_p3 }
  0x3a   : > { %p673_p13 = pneg %p672_p11 }
  0x3b   : > { %p679_p12 = por %p678_p10, %p677_p4 }
  0x3d   : > { %p680_p1 = pnand %p679_p12, %p673_p13 }
  0x3f   : > { %683 = shalt.err (!%p680_p1)
}
  0x40   : > { %s684_s25 = scalar_lea.vmem %s171_s19, 32  ;;  %s788_s3 = smov [#allocation5]  }
  0x41   : > { %p685_p2 = scmp.ne.s32.totalorder %s171_s19, %s684_s25  ;;  %s689_s7 = sshll.u32 %s788_s3, 4  ;;  %s690_s7 = int_to_ptr.vmem [resolvable:$false] %s689_s7 }
  0x42   : > { %s691_s8 = scalar_lea.vmem %s690_s7, 64  ;;  %p692_p8 = scmp.lt.s32.totalorder %s171_s19, %s690_s7 }
  0x43   : > { %p687_p9 = pnand %p685_p2, %p641_p5  ;;  %p693_p7 = scmp.lt.s32.totalorder %s691_s8, %s684_s25 }
  0x45   : > { %p688_p11 = pneg %p687_p9  ;;  %p694_p3 = por %p693_p7, %p692_p8 }
  0x47   : > { %p695_p6 = pnand %p694_p3, %p688_p11 }
  0x49   : > { %698 = shalt.err (!%p695_p6)
}
  0x4a   : > { %572 = dma.hbm_to_vmem [thread:$0]  (!%p886_p0), %s931_s16, 32, %s171_s19, %s157_s30  }
  0x4b   : > { %p1081_p13 = scmp.ne.s32.totalorder %s1080_s29, 0 }
  0x4c   : > { %s956_s15 = sand.u32 (!%p1081_p13), 1, %s769_s10   ;;  %p1082_p8 = scmp.ne.s32.totalorder (!%p1081_p13), %s1074_s21, 0 }
  0x4d   : > { %179 = sbr.rel (%p1081_p13) target bundleno = 382 (0x17e), region = 28  ;;  %s546_s18 = sshll.u32 (!%p1081_p13), %s956_s15, 3 }
  0x4e   : > { %s182_s4 = scalar_lea.sflag (!%p1081_p13), [#allocation3], %s956_s15  ;;  %s185_s6 = scalar_lea.vmem (!%p1081_p13), [#allocation2], %s546_s18 }
  0x54   : > { %752 = dma.done.wait (%p1082_p8), %s182_s4, 128  }
  0x55   : > { %754 = vsyncadd (%p1082_p8), %s182_s4, 4294967168  ;;  %s547_s5 = sshll.u32 %s956_s15, 1  ;;  %s191_s29 = scalar_lea.sflag [#allocation6], %s956_s15 }
  0x56   : > { %s194_s16 = scalar_lea.vmem [#allocation5], %s547_s5 }
  0x57   : > { %756 = dma.done.wait (%p1082_p8), %s191_s29, 32  }
  0x58   : > { %758 = vsyncadd (%p1082_p8), %s191_s29, 4294967264  ;;  %vm242_vm0 = vcmask 1043456   ;;  %v231_v0 = vld [vmem:[%s185_s6] sm:$0xff]  ;;  %v223_v3 = vlaneseq  ;;  %v978_v16 = vld [vmem:[%s194_s16] sm:$0x3]  ;;  %v790_v60 = vmov 1  }
  0x59   : > { %v237_v1 = vcombine.high %v231_v0, %v231_v0  ;;  %v243_v2 = vsel %vm242_vm0, %v231_v0, -inf  ;;  %v257_v30 = vsel %vm242_vm0, %v231_v0, 0.0  ;;  %v789_v40 = vmov 1966171168   ;;  %s551_s30 = sshll.u32 %s777_s12, 7  ;;  %s219_s20 = scalar_lea.vmem [#allocation7], %s546_s18 }
  0x5a   : > { %v244_v4 = vrot.slane %v243_v2, 4  ;;  %v975_v10 = vshrl.u32 %v223_v3, 7  ;;  %v258_v35 = vrot.slane %v257_v30, 4  ;;  %v326_v41 = vunpack.c.l.s4 %v789_v40  ;;  %s426_s26 = sshll.u32 %s219_s20, 4  ;;  %s1019_s3 = scalar_lea.hbm %s1070_s2, %s551_s30  ;;  %s1021_s26 = int_to_ptr.vmem [resolvable:$true] %s426_s26 }
  0x5b   : > { %v250_v5 = vsel %vm242_vm0, %v237_v1, -inf  ;;  %v264_v34 = vsel %vm242_vm0, %v237_v1, 0.0  ;;  %v324_v61 = vcombine.low %v790_v60, %v790_v60  ;;  %vm323_vm3 = vcmp.ne.s32.totalorder %v978_v16, 255  ;;  %s411_s12 = scalar_lea.sflag [#allocation4], %s956_s15  ;;  %s699_s7 = scalar_lea.vmem %s1021_s26, 128 }
  0x5c   : > { %v245_v6 = vmax.f32 %v243_v2, %v244_v4  ;;  %v251_v7 = vrot.slane %v250_v5, 4  ;;  %v299_v15 = vsub.s32 0, %v975_v10  ;;  %v303_v19 = vsub.s32 1, %v975_v10  ;;  %p700_p0 = scmp.ne.s32.totalorder %s1021_s26, %s699_s7  ;;  %p1083_p5 = scmp.ne.s32.totalorder %s1075_s22, 0 }
  0x5d   : > { %v265_v42 = vrot.slane %v264_v34, 4  ;;  %v259_v47 = vadd.f32 %v258_v35, %v257_v30  ;;  %v327_v51 = vunpack.c.0.s8 %v326_v41  ;;  %vm374_vm6 = vcmask 1040384   ;;  %s792_s8 = smov [#allocation7]  }
  0x5e   : > { %v246_v8 = vrot.slane %v245_v6, 2  ;;  %v252_v9 = vmax.f32 %v250_v5, %v251_v7  ;;  %v300_v22 = vrot.slane %v978_v16, %v299_v15  ;;  %v304_v25 = vrot.slane %v978_v16, %v303_v19  ;;  %p701_p7 = pnand %p700_p0, %p1083_p5  ;;  %s703_s18 = sshll.u32 %s792_s8, 4  ;;  %s704_s18 = int_to_ptr.vmem [resolvable:$false] %s703_s18 }
  0x5f   : > { %v266_v52 = vadd.f32 %v265_v42, %v264_v34  ;;  %v260_v56 = vrot.slane %v259_v47, 2  ;;  %v330_v62 = vsub.s32 %v327_v51, %v975_v10  ;;  %vm400_vm7 = vcmp.eq.s32.totalorder %v975_v10, 0  ;;  %s705_s4 = scalar_lea.vmem %s704_s18, 256  ;;  %p706_p10 = scmp.lt.s32.totalorder %s1021_s26, %s704_s18 }
  0x60   : > { %v247_v11 = vmax.f32 %v245_v6, %v246_v8  ;;  %v253_v12 = vrot.slane %v252_v9, 2  ;;  %vm305_vm1 = vcmp.eq.s32.totalorder %v975_v10, %v300_v22  ;;  %vm306_vm2 = vcmp.eq.s32.totalorder %v975_v10, %v304_v25  ;;  %p702_p4 = pneg %p701_p7  ;;  %p707_p12 = scmp.lt.s32.totalorder %s705_s4, %s699_s7 }
  0x61   : > { %v307_v27 = vsel %vm305_vm1, %v231_v0, 0.0  ;;  %v308_v28 = vsel %vm306_vm2, %v237_v1, 0.0  ;;  %v267_v63 = vrot.slane %v266_v52, 2  ;;  %v261_v4 = vadd.f32 %v260_v56, %v259_v47 }
  0x62   : > { %v248_v13 = vrot.slane %v247_v11, 1  ;;  %v254_v14 = vmax.f32 %v252_v9, %v253_v12  ;;  %v309_v29 = vsel %vm242_vm0, %v307_v27, 0.0  ;;  %v316_v31 = vsel %vm242_vm0, %v308_v28, 0.0  ;;  %p708_p1 = por %p707_p12, %p706_p10 }
  0x63   : > { %v310_v32 = vrot.slane %v309_v29, 4  ;;  %v317_v37 = vrot.slane %v316_v31, 4  ;;  %v331_v7 = vrot.slane %v324_v61, %v330_v62  ;;  %v268_v8 = vadd.f32 %v267_v63, %v266_v52 }
  0x64   : > { %v980_v17 = vmax.f32 %v247_v11, %v248_v13  ;;  %v255_v18 = vrot.slane %v254_v14, 1  ;;  %v262_v11 = vrot.slane %v261_v4, 1  ;;  %p709_p2 = pnand %p708_p1, %p702_p4 }
  0x65   : > { %v311_v44 = vadd.f32 %v310_v32, %v309_v29  ;;  %v318_v48 = vadd.f32 %v317_v37, %v316_v31  ;;  %v338_v13 = vrot.slane %v331_v7, %v330_v62 }
  0x66   : > { %v983_v20 = vmax.f32 %v254_v14, %v255_v18  ;;  %v271_v21 = vsub.f32 %v231_v0, %v980_v17  ;;  %v269_v14 = vrot.slane %v268_v8, 1 }
  0x67   : > { %v312_v53 = vrot.slane %v311_v44, 2  ;;  %v319_v57 = vrot.slane %v318_v48, 2  ;;  %vm339_vm4 = vcmp.ne.s32.totalorder %v338_v13, 0 }
  0x68   : > { %v272_v23 = vsub.f32 %v237_v1, %v983_v20  ;;  %v273_v24 = vmul.f32 1.442695, %v271_v21  ;;  %v263_v21 = vadd.f32 %v262_v11, %v261_v4  ;;  %v344_v25 = vmul.f32 4.0, %v983_v20  ;;  %vm340_vm5 = vmand %vm323_vm3, %vm339_vm4 }
  0x69   : > { %v313_v0 = vadd.f32 %v312_v53, %v311_v44  ;;  %v320_v5 = vadd.f32 %v319_v57, %v318_v48  ;;  %v224_v4 = vand.u32 127, %v223_v3 }
  0x6a   : > { %631 = vpow2.f32 %v273_v24  ;;  %v275_v26 = vmul.f32 1.442695, %v272_v23  ;;  %v343_v23 = vmul.f32 4.0, %v980_v17  ;;  %v270_v24 = vadd.f32 %v269_v14, %v268_v8 }
  0x6b   : > { %v314_v9 = vrot.slane %v313_v0, 1  ;;  %v321_v12 = vrot.slane %v320_v5, 1  ;;  %vm401_vm8 = vcmp.eq.s32.totalorder %v224_v4, 0  ;;  %vm405_vm9 = vcmp.eq.s32.totalorder %v224_v4, 1 }
  0x6c   : > { %633 = vpow2.f32 %v275_v26  ;;  %v345_v29 = vsub.f32 %v263_v21, %v343_v23  ;;  %vm402_vm10 = vmand %vm400_vm7, %vm401_vm8 }
  0x6d   : > { %v315_v18 = vadd.f32 %v314_v9, %v313_v0  ;;  %v322_v22 = vadd.f32 %v321_v12, %v320_v5  ;;  %vm406_vm11 = vmand %vm400_vm7, %vm405_vm9 }
  0x6f   : > { %v347_v26 = vsub.f32 %v315_v18, %v980_v17  ;;  %v348_v30 = vsub.f32 %v322_v22, %v983_v20 }
  0x74   : > { %v632_v33 = vpop.eup %631 }
  0x75   : > { %v277_v36 = vsel %vm242_vm0, %v632_v33, 0.0  ;;  %v346_v33 = vsub.f32 %v270_v24, %v344_v25 }
  0x76   : > { %v634_v38 = vpop.eup %633  ;;  %v278_v39 = vrot.slane %v277_v36, 4 }
  0x77   : > { %v284_v43 = vsel %vm242_vm0, %v634_v38, 0.0 }
  0x78   : > { %v279_v45 = vadd.f32 %v278_v39, %v277_v36  ;;  %v285_v46 = vrot.slane %v284_v43, 4  ;;  %v791_v36 = vmov 0.0  }
  0x79   : > { %v549_v37 = vsel %vm340_vm5, 1.0, %v791_v36 }
  0x7a   : > { %v280_v49 = vrot.slane %v279_v45, 2  ;;  %v286_v50 = vadd.f32 %v285_v46, %v284_v43  ;;  %v365_v43 = vrot.slane %v549_v37, %v299_v15  ;;  %v369_v20 = vrot.slane %v549_v37, %v303_v19 }
  0x7c   : > { %v281_v54 = vadd.f32 %v280_v49, %v279_v45  ;;  %v287_v55 = vrot.slane %v286_v50, 2  ;;  %v388_v51 = vsel %vm374_vm6, %v365_v43, 0.0  ;;  %v389_v52 = vsel %vm374_vm6, %v369_v20, 0.0 }
  0x7e   : > { %v282_v58 = vrot.slane %v281_v54, 1  ;;  %v288_v59 = vadd.f32 %v287_v55, %v286_v50 }
  0x80   : > { %v283_v1 = vadd.f32 %v282_v58, %v281_v54  ;;  %v289_v2 = vrot.slane %v288_v59, 1  ;;  %v390_v54 = vadd.f32 %v389_v52, %v388_v51 }
  0x82   : > { %v290_v6 = vadd.f32 %v289_v2, %v288_v59  ;;  %635 = vlog2.f32 %v283_v1 }
  0x84   : > { %637 = vlog2.f32 %v290_v6 }
  0x8c   : > { %v636_v27 = vpop.eup %635 }
  0x8d   : > { %v292_v28 = vmul.f32 0.6931472, %v636_v27 }
  0x8e   : > { %v638_v31 = vpop.eup %637 }
  0x8f   : > { %v294_v32 = vmul.f32 0.6931472, %v638_v31  ;;  %v349_v34 = vmul.f32 4.0, %v292_v28  ;;  %v355_v35 = vsub.f32 %v347_v26, %v292_v28 }
  0x91   : > { %v350_v16 = vmul.f32 4.0, %v294_v32  ;;  %v351_v38 = vsub.f32 %v345_v29, %v349_v34  ;;  %v356_v39 = vsub.f32 %v348_v30, %v294_v32  ;;  %v357_v40 = vmul.f32 0.895, %v355_v35 }
  0x93   : > { %v352_v41 = vsub.f32 %v346_v33, %v350_v16  ;;  %v353_v42 = vmul.f32 0.005, %v351_v38  ;;  %v358_v17 = vmul.f32 0.895, %v356_v39 }
  0x95   : > { %v354_v44 = vmul.f32 0.005, %v352_v41  ;;  %v359_v45 = vadd.f32 %v357_v40, %v353_v42 }
  0x97   : > { %v360_v46 = vadd.f32 %v358_v17, %v354_v44  ;;  %v372_v47 = vmul.f32 %v365_v43, %v359_v45 }
  0x99   : > { %v373_v48 = vmul.f32 %v369_v20, %v360_v46  ;;  %v375_v49 = vsel %vm374_vm6, %v372_v47, 0.0 }
  0x9b   : > { %v376_v50 = vsel %vm374_vm6, %v373_v48, 0.0 }
  0x9c   : > { %v377_v53 = vadd.f32 %v376_v50, %v375_v49 }
  0x9e   : > { %378 = vadd.xlane.f32.xlu0 %v377_v53 }
  0xa2   : > { %391 = vadd.xlane.f32.xlu0 %v390_v54 }
 0x12b   : > { %v379_v55 = vpop.xlane.xlu0 %378 }
 0x12c   : > { %v380_v56 = vrot.slane %v379_v55, 4 }
 0x12e   : > { %v381_v15 = vadd.f32 %v380_v56, %v379_v55 }
 0x12f   : > { %v392_v57 = vpop.xlane.xlu0 %391 }
 0x130   : > { %v382_v58 = vrot.slane %v381_v15, 2  ;;  %v393_v59 = vrot.slane %v392_v57, 4 }
 0x132   : > { %v394_v60 = vadd.f32 %v393_v59, %v392_v57  ;;  %v383_v19 = vadd.f32 %v382_v58, %v381_v15 }
 0x134   : > { %v395_v61 = vrot.slane %v394_v60, 2  ;;  %v384_v62 = vrot.slane %v383_v19, 1 }
 0x136   : > { %v396_v63 = vadd.f32 %v395_v61, %v394_v60  ;;  %v385_v0 = vadd.f32 %v384_v62, %v383_v19 }
 0x138   : > { %556 = vpush %v385_v0  ;;  %v397_v1 = vrot.slane %v396_v63, 1 }
 0x13a   : > { %v398_v2 = vadd.f32 %v397_v1, %v396_v63 }
 0x13c   : > { %558 = vpush %v398_v2 }
 0x169   : > { %s557_s21 = spop %556 }
 0x16a   : > { %s387_s19 = ssub.f32 0.0, %s557_s21 }
 0x16c   : > { %v403_v5 = vstv %s387_s19 }
 0x16d   : > { %v404_v6 = vsel %vm402_vm10, %v403_v5, 0.0  ;;  %s559_s27 = spop %558 }
 0x16e   : > { %v407_v7 = vstv %s559_s27 }
 0x16f   : > { %v408_v3 = vsel %vm406_vm11, %v407_v7, %v404_v6 }
 0x170   : > { %409 = vst [vmem:[%s219_s20] sm:$0xff] %v408_v3 }
 0x171   : > { %712 = shalt.err (!%p709_p2)
}
 0x172   : > { %s713_s15 = scalar_lea.hbm %s1019_s3, 128  ;;  %s717_s29 = scalar_lea.hbm %s1070_s2, 256 }
 0x173   : > { %p714_p9 = scmp.ne.s32.totalorder %s1019_s3, %s713_s15  ;;  %p718_p6 = scmp.lt.u32.totalorder %s1019_s3, %s1070_s2 }
 0x174   : > { %p719_p13 = scmp.lt.u32.totalorder %s717_s29, %s713_s15  ;;  %p721_p0 = scmp.lt.u32.totalorder %s713_s15, %s1019_s3 }
 0x175   : > { %p715_p11 = pnand %p714_p9, %p1083_p5 }
 0x176   : > { %p720_p8 = por %p719_p13, %p718_p6 }
 0x177   : > { %p716_p3 = pneg %p715_p11 }
 0x178   : > { %p722_p7 = por %p721_p0, %p720_p8 }
 0x17a   : > { %p723_p4 = pnand %p722_p7, %p716_p3 }
 0x17c   : > { %726 = shalt.err (!%p723_p4)
}
 0x17d   : > { %564 = dma.vmem_to_hbm [thread:$0]  (%p1083_p5), %s1021_s26, 128, %s1019_s3, %s411_s12  }
 0x17e PF: > { %s438_s19 = sand.u32 1, %s765_s9   ;;  %p1084_p10 = scmp.ne.s32.totalorder %s1076_s24, 0 }
 0x17f   : > { %p1085_p12 = scmp.ge.s32.totalorder %s785_s14, 2  ;;  %s439_s30 = scalar_lea.sflag [#allocation4], %s438_s19 }
 0x181   : > { %p574_p1 = pnand %p1085_p12, %p1084_p10 }
 0x183   : > { %760 = dma.done.wait (!%p574_p1), %s439_s30, 128  }
 0x184   : > { %762 = vsyncadd (!%p574_p1), %s439_s30, 4294967168  ;;  %s21_s14 = sadd.s32 1, %s785_s14   ;;  %s1086_s9 = smov %s769_s10 }
 0x185   : > { %p18_p2 = scmp.ge.s32.totalorder %s21_s14, 4   ;;  %s1087_s10 = smov %s773_s11 }
 0x186   : > { %s1088_s11 = smov %s864_s23  ;;  %s1089_s12 = smov %s781_s13 }
 0x187   : > { %s1090_s13 = smov %s1092_s17  ;;  %20 = sbr.rel (!%p18_p2) target bundleno = 8 (0x8), region = 86 }
 0x18e   :  { %444 = vsyncpa [#allocation3], 1 }
 0x18f   :  { %446 = vsyncpa [#allocation3 + $0x1], 1 }
 0x190   :  { %447 = vsyncpa [#allocation6], 1 }
 0x191   :  { %449 = vsyncpa [#allocation6 + $0x1], 1 }
 0x192   :  { %450 = vsyncpa [#allocation4], 1 }
 0x193   :  { %452 = vsyncpa [#allocation4 + $0x1], 1 }

</bundles_post_ra>
